<compile_context>
chip_gen: v6e
topology: v6e:2x2x1
jax: 0.10.0
libtpu: 0.0.40
codegen_flags: <defaults>
</compile_context>

<pallas_src>
import jax
import jax.numpy as jnp
from jax.experimental import pallas as pl
from jax.experimental.pallas import tpu as pltpu

# -------- synthetic env constants (stand-in for EdgeDeploymentEnv) ----------
STATE_DIM = 32          # env.state_dim
MAX_REQUESTS = 4        # env.max_requests
SERVERS_NUMBER = 3      # env.servers_number
CONTAINERS_NUMBER = 5   # env.containers_number
HIDDEN = 128

ALLOC_OUT = SERVERS_NUMBER + 1                       # 4
ALLOC_TOTAL = MAX_REQUESTS * ALLOC_OUT               # 16
LOAD_TOTAL = SERVERS_NUMBER * CONTAINERS_NUMBER      # 15
PROB_TOTAL = ALLOC_TOTAL + LOAD_TOTAL                # 31
HEAD_TOTAL = PROB_TOTAL + 1                          # 32 (value = last fused column)

MIN_TILE = 16           # bf16 sublane pack: 16 rows per vreg


def _round_up(n, m):
    return ((n + m - 1) // m) * m


def actor_critic_kernel(x_ref, w1_ref, b1_ref, w2_ref, b2_ref,
                        wh_ref, bh_ref, probs_ref, value_ref):
    # shared_layer: Linear -> ReLU -> Linear -> ReLU  (bf16 MXU, f32 accumulate)
    x = x_ref[...]                                            # streamed bf16
    h1 = jnp.maximum(
        jnp.dot(x, w1_ref[...], preferred_element_type=jnp.float32)
        + b1_ref[...], 0.0)
    feats = jnp.maximum(
        jnp.dot(h1.astype(jnp.bfloat16), w2_ref[...],
                preferred_element_type=jnp.float32)
        + b2_ref[...], 0.0)

    # All heads fused into ONE (128, 32) matmul: (tile_m, 128) @ (128, 32).
    heads = (jnp.dot(feats.astype(jnp.bfloat16), wh_ref[...],
                     preferred_element_type=jnp.float32)
             + bh_ref[...])                                    # (tile_m, 32) f32

    # Build ONE non-positive argument slab so a single exp serves every head:
    #   alloc heads : logits - per-group max   (softmax shift)
    #   load heads  : -|x|                     (stable-sigmoid shift)
    shifted = []
    for h in range(MAX_REQUESTS):
        logits = heads[:, h * ALLOC_OUT:(h + 1) * ALLOC_OUT]
        shifted.append(logits - jnp.max(logits, axis=-1, keepdims=True))
    load_pre = heads[:, ALLOC_TOTAL:PROB_TOTAL]
    shifted.append(-jnp.abs(load_pre))
    e = jnp.exp(jnp.concatenate(shifted, axis=-1))             # (tile_m, 31)

    # Exact normalisation (these probabilities feed Categorical / Bernoulli).
    pieces = []
    for h in range(MAX_REQUESTS):
        eg = e[:, h * ALLOC_OUT:(h + 1) * ALLOC_OUT]
        pieces.append(eg / jnp.sum(eg, axis=-1, keepdims=True))
    e_load = e[:, ALLOC_TOTAL:PROB_TOTAL]
    inv = 1.0 / (1.0 + e_load)
    load_probs = jnp.where(load_pre >= 0.0, inv, e_load * inv)

    # One full-tile bf16 store of the probability slab; value stays f32.
    probs_ref[...] = jnp.concatenate(pieces + [load_probs],
                                     axis=-1).astype(jnp.bfloat16)
    value_ref[...] = heads[:, PROB_TOTAL:HEAD_TOTAL]


def actor_critic_forward(x, params, alloc_mask=None, load_mask=None,
                         block_m=2048):
    """Returns (alloc_probs, load_probs, value) matching the PyTorch forward."""
    B = x.shape[0]
    x_bf = x.astype(jnp.bfloat16)              # halve streamed input bytes

    if B <= MIN_TILE:
        # Tiny batch: pad up to one minimum tile (a few hundred bytes) so we
        # never request a block larger than the whole array.
        B_eff = MIN_TILE
        if B_eff != B:
            x_bf = jnp.pad(x_bf, ((0, B_eff - B), (0, 0)))
        tile_m = MIN_TILE
    else:
        # No host-side pad for real batches: Pallas handles the ragged last
        # block (its garbage rows may produce inf/NaN inside exp but those rows
        # are never stored).  Split >=2 ways so the "parallel" batch axis can
        # feed both v7x TensorCores; cap at block_m to bound VMEM (~a few MiB).
        B_eff = B
        tile_m = min(block_m, _round_up(pl.cdiv(B, 2), MIN_TILE))
    grid = (pl.cdiv(B_eff, tile_m),)

    const = lambda shape: pl.BlockSpec(shape, lambda i: (0, 0))  # VMEM-resident
    probs, value = pl.pallas_call(
        actor_critic_kernel,
        out_shape=(jax.ShapeDtypeStruct((B_eff, PROB_TOTAL), jnp.bfloat16),
                   jax.ShapeDtypeStruct((B_eff, 1), jnp.float32)),
        grid=grid,
        in_specs=[
            pl.BlockSpec((tile_m, STATE_DIM), lambda i: (i, 0)),   # x (streamed bf16)
            const((STATE_DIM, HIDDEN)),                            # w1
            const((1, HIDDEN)),                                    # b1
            const((HIDDEN, HIDDEN)),                               # w2
            const((1, HIDDEN)),                                    # b2
            const((HIDDEN, HEAD_TOTAL)),                           # fused head W
            const((1, HEAD_TOTAL)),                                # fused head b
        ],
        out_specs=(
            pl.BlockSpec((tile_m, PROB_TOTAL), lambda i: (i, 0)),  # bf16 prob slab
            pl.BlockSpec((tile_m, 1), lambda i: (i, 0)),           # f32 value
        ),
        compiler_params=pltpu.CompilerParams(
            dimension_semantics=("parallel",)),
    )(x_bf, params["w1"], params["b1"], params["w2"], params["b2"],
      params["wh"], params["bh"])

    probs = probs[:B].astype(jnp.float32)
    alloc = probs[:, :ALLOC_TOTAL].reshape(B, MAX_REQUESTS, ALLOC_OUT)
    load = probs[:, ALLOC_TOTAL:PROB_TOTAL].reshape(
        B, SERVERS_NUMBER, CONTAINERS_NUMBER)
    value = value[:B, 0]

    # Mask handling is cheap elementwise glue in plain JAX.
    # NOTE: the PyTorch reference applies the alloc mask AFTER softmax
    # (alloc_logits[~alloc_mask] = -1e8 on the probabilities); we match that.
    if alloc_mask is not None:
        alloc = jnp.where(alloc_mask, alloc, jnp.float32(-100000000.0))
    if load_mask is not None:
        load = load * load_mask.astype(jnp.float32)
    return alloc, load, value


def init_params(key):
    """PyTorch-Linear-style init U(-1/sqrt(fan_in), 1/sqrt(fan_in)).

    Weights pre-transposed to (fan_in, fan_out); all head weights fused into one
    (128, 32) matrix; weights stored bf16 (MXU native); biases 2-D (1, N) f32.
    """
    def linear(k, fan_in, fan_out):
        kw, kb = jax.random.split(k)
        bound = 1.0 / (fan_in ** 0.5)
        w = jax.random.uniform(kw, (fan_in, fan_out), jnp.float32, -bound, bound)
        b = jax.random.uniform(kb, (fan_out,), jnp.float32, -bound, bound)
        return w, b

    n_keys = 3 + MAX_REQUESTS + SERVERS_NUMBER
    keys = jax.random.split(key, n_keys)
    ki = iter(keys)

    w1, b1 = linear(next(ki), STATE_DIM, HIDDEN)
    w2, b2 = linear(next(ki), HIDDEN, HIDDEN)

    head_ws, head_bs = [], []
    for _ in range(MAX_REQUESTS):                       # alloc heads
        w, b = linear(next(ki), HIDDEN, ALLOC_OUT)
        head_ws.append(w); head_bs.append(b)
    for _ in range(SERVERS_NUMBER):                     # load heads
        w, b = linear(next(ki), HIDDEN, CONTAINERS_NUMBER)
        head_ws.append(w); head_bs.append(b)
    wv, bv = linear(next(ki), HIDDEN, 1)                # value head
    head_ws.append(wv); head_bs.append(bv)

    wh = jnp.concatenate(head_ws, axis=1)               # (128, 32)
    bh = jnp.concatenate(head_bs, axis=0)               # (32,)

    bf16 = jnp.bfloat16
    return dict(
        w1=w1.astype(bf16), b1=b1.reshape(1, -1),
        w2=w2.astype(bf16), b2=b2.reshape(1, -1),
        wh=wh.astype(bf16), bh=bh.reshape(1, -1),
    )


if __name__ == "__main__":
    key = jax.random.PRNGKey(0)
    k_params, k_x = jax.random.split(key)
    params = init_params(k_params)

    batch = 2
    x = jax.random.normal(k_x, (batch, STATE_DIM), dtype=jnp.float32)

    alloc_probs, load_probs, value = actor_critic_forward(x, params)
    jax.block_until_ready((alloc_probs, load_probs, value))

    assert alloc_probs.shape == (batch, MAX_REQUESTS, SERVERS_NUMBER + 1)
    assert load_probs.shape == (batch, SERVERS_NUMBER, CONTAINERS_NUMBER)
    assert value.shape == (batch,)
    # softmax rows should sum to ~1 (bf16 weights + bf16 prob slab -> loose tol)
    assert bool(jnp.allclose(jnp.sum(alloc_probs, axis=-1), 1.0, atol=2e-2))
    # stable sigmoid with exact divide stays inside [0, 1] (bf16 rounding-safe)
    assert bool(jnp.all((load_probs >= 0.0) & (load_probs <= 1.0)))
    assert bool(jnp.all(jnp.isfinite(value)))

    print("KERNEL_OK")
</pallas_src>

<mosaic_0001>
module attributes {stable_mosaic.version = 11 : i64} {
  func.func @actor_critic_kernel(%arg0: i32, %arg1: memref<16x32xbf16, #tpu.memory_space<vmem>>, %arg2: memref<32x128xbf16, #tpu.memory_space<vmem>>, %arg3: memref<1x128xf32, #tpu.memory_space<vmem>>, %arg4: memref<128x128xbf16, #tpu.memory_space<vmem>>, %arg5: memref<1x128xf32, #tpu.memory_space<vmem>>, %arg6: memref<128x32xbf16, #tpu.memory_space<vmem>>, %arg7: memref<1x32xf32, #tpu.memory_space<vmem>>, %arg8: memref<16x31xbf16, #tpu.memory_space<vmem>>, %arg9: memref<16x1xf32, #tpu.memory_space<vmem>>) attributes {dimension_semantics = [#tpu.dimension_semantics<parallel>], iteration_bounds = array<i64: 1>, scalar_prefetch = 0 : i64, scratch_operands = 0 : i64, tpu.core_type = #tpu.core_type<tc>, window_params = [{transform_indices = @transform_0, window_bounds = array<i64: 16, 32>}, {pipeline_mode = #tpu.pipeline_mode<synchronous>, transform_indices = @transform_1, window_bounds = array<i64: 32, 128>}, {pipeline_mode = #tpu.pipeline_mode<synchronous>, transform_indices = @transform_2, window_bounds = array<i64: 1, 128>}, {pipeline_mode = #tpu.pipeline_mode<synchronous>, transform_indices = @transform_3, window_bounds = array<i64: 128, 128>}, {pipeline_mode = #tpu.pipeline_mode<synchronous>, transform_indices = @transform_4, window_bounds = array<i64: 1, 128>}, {pipeline_mode = #tpu.pipeline_mode<synchronous>, transform_indices = @transform_5, window_bounds = array<i64: 128, 32>}, {pipeline_mode = #tpu.pipeline_mode<synchronous>, transform_indices = @transform_6, window_bounds = array<i64: 1, 32>}, {transform_indices = @transform_7, window_bounds = array<i64: 16, 31>}, {transform_indices = @transform_8, window_bounds = array<i64: 16, 1>}]} {
    %c0 = arith.constant 0 : index
    %c0_0 = arith.constant 0 : index
    %0 = vector.load %arg1[%c0, %c0_0] : memref<16x32xbf16, #tpu.memory_space<vmem>>, vector<16x32xbf16>
    %c0_1 = arith.constant 0 : index
    %c0_2 = arith.constant 0 : index
    %1 = vector.load %arg2[%c0_1, %c0_2] : memref<32x128xbf16, #tpu.memory_space<vmem>>, vector<32x128xbf16>
    %cst = arith.constant dense<0.000000e+00> : vector<16x128xf32>
    %2 = tpu.matmul %0, %1, %cst {dimension_numbers = #tpu.dot_dimension_numbers<[1], [0], [0], [1], [0, 0, 1, 1], [], []>} : vector<16x32xbf16>, vector<32x128xbf16>, vector<16x128xf32> -> vector<16x128xf32>
    %c0_3 = arith.constant 0 : index
    %c0_4 = arith.constant 0 : index
    %3 = vector.load %arg3[%c0_3, %c0_4] : memref<1x128xf32, #tpu.memory_space<vmem>>, vector<1x128xf32>
    %4 = vector.broadcast %3 : vector<1x128xf32> to vector<16x128xf32>
    %5 = arith.addf %2, %4 : vector<16x128xf32>
    %cst_5 = arith.constant 0.000000e+00 : f32
    %6 = vector.broadcast %cst_5 : f32 to vector<16x128xf32>
    %7 = arith.maximumf %5, %6 : vector<16x128xf32>
    %8 = arith.truncf %7 : vector<16x128xf32> to vector<16x128xbf16>
    %c0_6 = arith.constant 0 : index
    %c0_7 = arith.constant 0 : index
    %9 = vector.load %arg4[%c0_6, %c0_7] : memref<128x128xbf16, #tpu.memory_space<vmem>>, vector<128x128xbf16>
    %cst_8 = arith.constant dense<0.000000e+00> : vector<16x128xf32>
    %10 = tpu.matmul %8, %9, %cst_8 {dimension_numbers = #tpu.dot_dimension_numbers<[1], [0], [0], [1], [0, 0, 1, 1], [], []>} : vector<16x128xbf16>, vector<128x128xbf16>, vector<16x128xf32> -> vector<16x128xf32>
    %c0_9 = arith.constant 0 : index
    %c0_10 = arith.constant 0 : index
    %11 = vector.load %arg5[%c0_9, %c0_10] : memref<1x128xf32, #tpu.memory_space<vmem>>, vector<1x128xf32>
    %12 = vector.broadcast %11 : vector<1x128xf32> to vector<16x128xf32>
    %13 = arith.addf %10, %12 : vector<16x128xf32>
    %cst_11 = arith.constant 0.000000e+00 : f32
    %14 = vector.broadcast %cst_11 : f32 to vector<16x128xf32>
    %15 = arith.maximumf %13, %14 : vector<16x128xf32>
    %16 = arith.truncf %15 : vector<16x128xf32> to vector<16x128xbf16>
    %c0_12 = arith.constant 0 : index
    %c0_13 = arith.constant 0 : index
    %17 = vector.load %arg6[%c0_12, %c0_13] : memref<128x32xbf16, #tpu.memory_space<vmem>>, vector<128x32xbf16>
    %cst_14 = arith.constant dense<0.000000e+00> : vector<16x32xf32>
    %18 = tpu.matmul %16, %17, %cst_14 {dimension_numbers = #tpu.dot_dimension_numbers<[1], [0], [0], [1], [0, 0, 1, 1], [], []>} : vector<16x128xbf16>, vector<128x32xbf16>, vector<16x32xf32> -> vector<16x32xf32>
    %c0_15 = arith.constant 0 : index
    %c0_16 = arith.constant 0 : index
    %19 = vector.load %arg7[%c0_15, %c0_16] : memref<1x32xf32, #tpu.memory_space<vmem>>, vector<1x32xf32>
    %20 = vector.broadcast %19 : vector<1x32xf32> to vector<16x32xf32>
    %21 = arith.addf %18, %20 : vector<16x32xf32>
    %22 = vector.extract_strided_slice %21 {offsets = [0, 0], sizes = [16, 4], strides = [1, 1]} : vector<16x32xf32> to vector<16x4xf32>
    %cst_17 = arith.constant dense<0xFF800000> : vector<16xf32>
    %23 = vector.multi_reduction <maximumf>, %22, %cst_17 [1] : vector<16x4xf32> to vector<16xf32>
    %24 = vector.shape_cast %23 : vector<16xf32> to vector<16x1xf32>
    %25 = vector.broadcast %24 : vector<16x1xf32> to vector<16x4xf32>
    %26 = arith.subf %22, %25 : vector<16x4xf32>
    %27 = vector.extract_strided_slice %21 {offsets = [0, 4], sizes = [16, 4], strides = [1, 1]} : vector<16x32xf32> to vector<16x4xf32>
    %cst_18 = arith.constant dense<0xFF800000> : vector<16xf32>
    %28 = vector.multi_reduction <maximumf>, %27, %cst_18 [1] : vector<16x4xf32> to vector<16xf32>
    %29 = vector.shape_cast %28 : vector<16xf32> to vector<16x1xf32>
    %30 = vector.broadcast %29 : vector<16x1xf32> to vector<16x4xf32>
    %31 = arith.subf %27, %30 : vector<16x4xf32>
    %32 = vector.extract_strided_slice %21 {offsets = [0, 8], sizes = [16, 4], strides = [1, 1]} : vector<16x32xf32> to vector<16x4xf32>
    %cst_19 = arith.constant dense<0xFF800000> : vector<16xf32>
    %33 = vector.multi_reduction <maximumf>, %32, %cst_19 [1] : vector<16x4xf32> to vector<16xf32>
    %34 = vector.shape_cast %33 : vector<16xf32> to vector<16x1xf32>
    %35 = vector.broadcast %34 : vector<16x1xf32> to vector<16x4xf32>
    %36 = arith.subf %32, %35 : vector<16x4xf32>
    %37 = vector.extract_strided_slice %21 {offsets = [0, 12], sizes = [16, 4], strides = [1, 1]} : vector<16x32xf32> to vector<16x4xf32>
    %cst_20 = arith.constant dense<0xFF800000> : vector<16xf32>
    %38 = vector.multi_reduction <maximumf>, %37, %cst_20 [1] : vector<16x4xf32> to vector<16xf32>
    %39 = vector.shape_cast %38 : vector<16xf32> to vector<16x1xf32>
    %40 = vector.broadcast %39 : vector<16x1xf32> to vector<16x4xf32>
    %41 = arith.subf %37, %40 : vector<16x4xf32>
    %42 = vector.extract_strided_slice %21 {offsets = [0, 16], sizes = [16, 15], strides = [1, 1]} : vector<16x32xf32> to vector<16x15xf32>
    %43 = math.absf %42 : vector<16x15xf32>
    %cst_21 = arith.constant 0.000000e+00 : f32
    %44 = vector.broadcast %cst_21 : f32 to vector<16x15xf32>
    %45 = arith.subf %44, %43 : vector<16x15xf32>
    %46 = tpu.concatenate %26, %31, %36, %41, %45 in 1 : vector<16x4xf32>, vector<16x4xf32>, vector<16x4xf32>, vector<16x4xf32>, vector<16x15xf32> -> vector<16x31xf32>
    %47 = math.exp %46 : vector<16x31xf32>
    %48 = vector.extract_strided_slice %47 {offsets = [0, 0], sizes = [16, 4], strides = [1, 1]} : vector<16x31xf32> to vector<16x4xf32>
    %cst_22 = arith.constant dense<0.000000e+00> : vector<16xf32>
    %49 = vector.multi_reduction <add>, %48, %cst_22 [1] : vector<16x4xf32> to vector<16xf32>
    %50 = vector.shape_cast %49 : vector<16xf32> to vector<16x1xf32>
    %51 = vector.broadcast %50 : vector<16x1xf32> to vector<16x4xf32>
    %52 = arith.divf %48, %51 : vector<16x4xf32>
    %53 = vector.extract_strided_slice %47 {offsets = [0, 4], sizes = [16, 4], strides = [1, 1]} : vector<16x31xf32> to vector<16x4xf32>
    %cst_23 = arith.constant dense<0.000000e+00> : vector<16xf32>
    %54 = vector.multi_reduction <add>, %53, %cst_23 [1] : vector<16x4xf32> to vector<16xf32>
    %55 = vector.shape_cast %54 : vector<16xf32> to vector<16x1xf32>
    %56 = vector.broadcast %55 : vector<16x1xf32> to vector<16x4xf32>
    %57 = arith.divf %53, %56 : vector<16x4xf32>
    %58 = vector.extract_strided_slice %47 {offsets = [0, 8], sizes = [16, 4], strides = [1, 1]} : vector<16x31xf32> to vector<16x4xf32>
    %cst_24 = arith.constant dense<0.000000e+00> : vector<16xf32>
    %59 = vector.multi_reduction <add>, %58, %cst_24 [1] : vector<16x4xf32> to vector<16xf32>
    %60 = vector.shape_cast %59 : vector<16xf32> to vector<16x1xf32>
    %61 = vector.broadcast %60 : vector<16x1xf32> to vector<16x4xf32>
    %62 = arith.divf %58, %61 : vector<16x4xf32>
    %63 = vector.extract_strided_slice %47 {offsets = [0, 12], sizes = [16, 4], strides = [1, 1]} : vector<16x31xf32> to vector<16x4xf32>
    %cst_25 = arith.constant dense<0.000000e+00> : vector<16xf32>
    %64 = vector.multi_reduction <add>, %63, %cst_25 [1] : vector<16x4xf32> to vector<16xf32>
    %65 = vector.shape_cast %64 : vector<16xf32> to vector<16x1xf32>
    %66 = vector.broadcast %65 : vector<16x1xf32> to vector<16x4xf32>
    %67 = arith.divf %63, %66 : vector<16x4xf32>
    %68 = vector.extract_strided_slice %47 {offsets = [0, 16], sizes = [16, 15], strides = [1, 1]} : vector<16x31xf32> to vector<16x15xf32>
    %cst_26 = arith.constant 1.000000e+00 : f32
    %69 = vector.broadcast %cst_26 : f32 to vector<16x15xf32>
    %70 = arith.addf %69, %68 : vector<16x15xf32>
    %cst_27 = arith.constant 1.000000e+00 : f32
    %71 = vector.broadcast %cst_27 : f32 to vector<16x15xf32>
    %72 = arith.divf %71, %70 : vector<16x15xf32>
    %cst_28 = arith.constant 0.000000e+00 : f32
    %73 = vector.broadcast %cst_28 : f32 to vector<16x15xf32>
    %74 = arith.cmpf oge, %42, %73 : vector<16x15xf32>
    %75 = arith.mulf %68, %72 : vector<16x15xf32>
    %76 = arith.select %74, %72, %75 : vector<16x15xi1>, vector<16x15xf32>
    %77 = tpu.concatenate %52, %57, %62, %67, %76 in 1 : vector<16x4xf32>, vector<16x4xf32>, vector<16x4xf32>, vector<16x4xf32>, vector<16x15xf32> -> vector<16x31xf32>
    %78 = arith.truncf %77 : vector<16x31xf32> to vector<16x31xbf16>
    %c0_29 = arith.constant 0 : index
    %c0_30 = arith.constant 0 : index
    %79 = vector.load %arg8[%c0_29, %c0_30] : memref<16x31xbf16, #tpu.memory_space<vmem>>, vector<16x31xbf16>
    tpu.vector_store %arg8[%c0_29, %c0_30], %78 {strides = array<i32>} : memref<16x31xbf16, #tpu.memory_space<vmem>>, vector<16x31xbf16>,
    %80 = vector.extract_strided_slice %21 {offsets = [0, 31], sizes = [16, 1], strides = [1, 1]} : vector<16x32xf32> to vector<16x1xf32>
    %c0_31 = arith.constant 0 : index
    %c0_32 = arith.constant 0 : index
    %81 = vector.load %arg9[%c0_31, %c0_32] : memref<16x1xf32, #tpu.memory_space<vmem>>, vector<16x1xf32>
    tpu.vector_store %arg9[%c0_31, %c0_32], %80 {strides = array<i32>} : memref<16x1xf32, #tpu.memory_space<vmem>>, vector<16x1xf32>,
    return
  }
  func.func @transform_0(%arg0: i32) -> (i32, i32) {
    %c0_i32 = arith.constant 0 : i32
    %c0_i32_0 = arith.constant 0 : i32
    return %arg0, %c0_i32 : i32, i32
  }
  func.func @transform_1(%arg0: i32) -> (i32, i32) {
    %c0_i32 = arith.constant 0 : i32
    %c0_i32_0 = arith.constant 0 : i32
    %c0_i32_1 = arith.constant 0 : i32
    return %c0_i32, %c0_i32_0 : i32, i32
  }
  func.func @transform_2(%arg0: i32) -> (i32, i32) {
    %c0_i32 = arith.constant 0 : i32
    %c0_i32_0 = arith.constant 0 : i32
    %c0_i32_1 = arith.constant 0 : i32
    return %c0_i32, %c0_i32_0 : i32, i32
  }
  func.func @transform_3(%arg0: i32) -> (i32, i32) {
    %c0_i32 = arith.constant 0 : i32
    %c0_i32_0 = arith.constant 0 : i32
    %c0_i32_1 = arith.constant 0 : i32
    return %c0_i32, %c0_i32_0 : i32, i32
  }
  func.func @transform_4(%arg0: i32) -> (i32, i32) {
    %c0_i32 = arith.constant 0 : i32
    %c0_i32_0 = arith.constant 0 : i32
    %c0_i32_1 = arith.constant 0 : i32
    return %c0_i32, %c0_i32_0 : i32, i32
  }
  func.func @transform_5(%arg0: i32) -> (i32, i32) {
    %c0_i32 = arith.constant 0 : i32
    %c0_i32_0 = arith.constant 0 : i32
    %c0_i32_1 = arith.constant 0 : i32
    return %c0_i32, %c0_i32_0 : i32, i32
  }
  func.func @transform_6(%arg0: i32) -> (i32, i32) {
    %c0_i32 = arith.constant 0 : i32
    %c0_i32_0 = arith.constant 0 : i32
    %c0_i32_1 = arith.constant 0 : i32
    return %c0_i32, %c0_i32_0 : i32, i32
  }
  func.func @transform_7(%arg0: i32) -> (i32, i32) {
    %c0_i32 = arith.constant 0 : i32
    %c0_i32_0 = arith.constant 0 : i32
    return %arg0, %c0_i32 : i32, i32
  }
  func.func @transform_8(%arg0: i32) -> (i32, i32) {
    %c0_i32 = arith.constant 0 : i32
    %c0_i32_0 = arith.constant 0 : i32
    return %arg0, %c0_i32 : i32, i32
  }
}

</mosaic_0001>

<bundles_post_ra>
// kernel: tpu_custom_call.1
= control target key start
LH: loop header
LB: loop body
LE: loop exit
PB: predicated region body
PF: predicated region fallthrough
CT: control target
= control target key end

     0   :  { %14 = vsyncpa [#allocation3], 0  ;;  %s956_s0 = inlined_call_operand.hbm [shape: bf16[16,32], index: 0, kind: input, shape index: {}]   ;;  %s957_s1 = inlined_call_operand.vmem [shape: bf16[32,128], index: 1, kind: input, shape index: {}]   ;;  %s958_s2 = inlined_call_operand.vmem [shape: f32[1,128], index: 2, kind: input, shape index: {}]   ;;  %s959_s3 = inlined_call_operand.vmem [shape: bf16[128,128], index: 3, kind: input, shape index: {}]   ;;  %s960_s4 = inlined_call_operand.vmem [shape: f32[1,128], index: 4, kind: input, shape index: {}]   ;;  %s961_s5 = inlined_call_operand.vmem [shape: bf16[128,32], index: 5, kind: input, shape index: {}]   ;;  %s962_s6 = inlined_call_operand.vmem [shape: f32[1,32], index: 6, kind: input, shape index: {}]   ;;  %s963_s7 = inlined_call_operand.hbm [shape: bf16[16,31], index: 7, kind: output, shape index: {0}]   ;;  %s964_s8 = inlined_call_operand.vmem [shape: f32[16,1], index: 8, kind: output, shape index: {1}]  }
   0x1   :  { %15 = vsyncpa [#allocation4], 0  ;;  %s720_s27 = smov [#allocation2]  }
   0x2   :  { %s21_s28 = sshll.u32 %s720_s27, 4  ;;  %s22_s28 = int_to_ptr.vmem [resolvable:$true] %s21_s28 }
   0x3   :  { %s684_s29 = scalar_lea.vmem %s22_s28, 128  ;;  %p689_p1 = scmp.lt.s32.totalorder %s22_s28, %s22_s28 }
   0x4   :  { %p685_p0 = scmp.ne.s32.totalorder %s22_s28, %s684_s29  ;;  %p690_p2 = scmp.lt.s32.totalorder %s684_s29, %s684_s29 }
   0x6   :  { %p691_p3 = por %p690_p2, %p689_p1 }
   0x8   :  { %p692_p4 = pnand %p691_p3, %p685_p0 }
   0xa   :  { %695 = shalt.err (!%p692_p4)
}
   0xb   :  { %s721_s30 = smov 64   ;;  %s722_s9 = smov 4  }
   0xc   :  { %27 = dma.hbm_to_vmem [thread:$0]  %s956_s0, 128, %s22_s28, [#allocation3], %s721_s30, %s721_s30, %s722_s9  }
   0xd   :  { %716 = dma.done.wait [#allocation3], 128  }
   0xe   :  { %717 = vsyncadd [#allocation3], 4294967168  ;;  %v723_v0 = vmov 0.0   ;;  %vm724_vm0 = vmmov 0   ;;  %v633_v1 = vld [vmem:[%s957_s1 + $0x8] sm:$0xff]   ;;  %v634_v2 = vld [vmem:[%s957_s1] sm:$0xff]  }
   0xf   :  { %575 = vmatprep.subr.bf16.mxu0 %v723_v0  ;;  %579 = vmatprep.mubr.msk.bf16.mxu0 %vm724_vm0, %v723_v0  ;;  %v636_v3 = vld [vmem:[%s959_s3 + $0x38] sm:$0xff]   ;;  %v635_v4 = vld [vmem:[#allocation2] sm:$0xff]   ;;  %v637_v5 = vld [vmem:[%s959_s3 + $0x30] sm:$0xff]   ;;  %vm74_vm1 = vcmask 261120   ;;  %vm358_vm2 = vcmask 64544   ;;  %vm349_vm3 = vcmask 31744  }
  0x10   :  { %583 = vmatprep.subr.bf16.mxu1 %v723_v0  ;;  %599 = vmatprep.mubr.msk.bf16.mxu1 %vm724_vm0, %v723_v0  ;;  %v638_v6 = vld [vmem:[%s959_s3 + $0x28] sm:$0xff]   ;;  %v639_v7 = vld [vmem:[%s959_s3 + $0x20] sm:$0xff]   ;;  %v640_v8 = vld [vmem:[%s959_s3 + $0x18] sm:$0xff]   ;;  %vm367_vm4 = vcmask 97344   ;;  %vm376_vm5 = vcmask 130144   ;;  %vm391_vm6 = vcmask 64512  }
  0x11   :  { %576 = vmatpush3.bf16.msra.mxu0 %v633_v1  ;;  %584 = vmatpush3.bf16.msra.mxu1 %v636_v3  ;;  %v641_v9 = vld [vmem:[%s959_s3 + $0x10] sm:$0xff]   ;;  %v642_v10 = vld [vmem:[%s959_s3 + $0x8] sm:$0xff]   ;;  %v643_v11 = vld [vmem:[%s959_s3] sm:$0xff]   ;;  %vm394_vm7 = vcmask 97280   ;;  %vm397_vm8 = vcmask 130048   ;;  %s728_s28 = smov 97  }
  0x12   :  { %577 = vmatprep.subr.bf16.mxu0 %v723_v0  ;;  %585 = vmatprep.subr.bf16.mxu1 %v723_v0  ;;  %v644_v12 = vld [vmem:[%s961_s5 + $0x38] sm:$0xff]   ;;  %v645_v13 = vld [vmem:[%s961_s5 + $0x30] sm:$0xff]   ;;  %v646_v14 = vld [vmem:[%s961_s5 + $0x28] sm:$0xff]   ;;  %vm503_vm9 = vcmask 7168   ;;  %vm492_vm12 = vcmask 248832  }
  0x13   :  { %v647_v15 = vld [vmem:[%s961_s5 + $0x20] sm:$0xff]   ;;  %v648_v16 = vld [vmem:[%s961_s5 + $0x18] sm:$0xff]   ;;  %v649_v27 = vld [vmem:[%s961_s5 + $0x10] sm:$0xff]  }
  0x14   :  { %v527_v17 = vld [vmem:[%s958_s2] ss:$0 sm:$0xff]  ;;  %v650_v28 = vld [vmem:[%s961_s5 + $0x8] sm:$0xff]  }
  0x15   :  { %578 = vmatpush3.bf16.msra.mxu0 %v634_v2  ;;  %586 = vmatpush3.bf16.msra.mxu1 %v637_v5  ;;  %v651_v29 = vld [vmem:[%s961_s5] sm:$0xff]   ;;  %s726_s5 = smov 124  }
  0x16   :  { %603 = vmatprep.subr.bf16.mxu0 %v723_v0  ;;  %587 = vmatprep.subr.bf16.mxu1 %v723_v0  ;;  %v532_v30 = vld [vmem:[%s960_s4] ss:$0 sm:$0xff]  ;;  %s725_s4 = smov 120  }
  0x17   :  { %v541_v40 = vld [vmem:[%s962_s6] ss:$0 sm:$0xff]  ;;  %s727_s6 = smov 116  }
  0x18   :  { %580 = vmatmul.mubr.msk.bf16.vlgmr.msra.gmra.mxu0 %vm74_vm1, %v635_v4 }
  0x19   :  { %619 = vmatprep.mubr.msk.bf16.mxu0 %vm724_vm0, %v723_v0  ;;  %588 = vmatpush3.bf16.msra.mxu1 %v638_v6 }
  0x1a   :  { %589 = vmatprep.subr.bf16.mxu1 %v723_v0  ;;  %604 = vmatpush3.bf16.msra.mxu0 %v644_v12 }
  0x1b   :  { %605 = vmatprep.subr.bf16.mxu0 %v723_v0 }
  0x1d   :  { %590 = vmatpush3.bf16.msra.mxu1 %v639_v7 }
  0x1e   :  { %591 = vmatprep.subr.bf16.mxu1 %v723_v0  ;;  %606 = vmatpush3.bf16.msra.mxu0 %v645_v13 }
  0x1f   :  { %607 = vmatprep.subr.bf16.mxu0 %v723_v0 }
  0x21   :  { %592 = vmatpush3.bf16.msra.mxu1 %v640_v8 }
  0x22   :  { %593 = vmatprep.subr.bf16.mxu1 %v723_v0  ;;  %608 = vmatpush3.bf16.msra.mxu0 %v646_v14 }
  0x23   :  { %609 = vmatprep.subr.bf16.mxu0 %v723_v0 }
  0x25   :  { %594 = vmatpush3.bf16.msra.mxu1 %v641_v9 }
  0x26   :  { %595 = vmatprep.subr.bf16.mxu1 %v723_v0  ;;  %610 = vmatpush3.bf16.msra.mxu0 %v647_v15 }
  0x27   :  { %611 = vmatprep.subr.bf16.mxu0 %v723_v0 }
  0x29   :  { %596 = vmatpush3.bf16.msra.mxu1 %v642_v10 }
  0x2a   :  { %597 = vmatprep.subr.bf16.mxu1 %v723_v0  ;;  %612 = vmatpush3.bf16.msra.mxu0 %v648_v16 }
  0x2b   :  { %613 = vmatprep.subr.bf16.mxu0 %v723_v0 }
  0x2d   :  { %598 = vmatpush3.bf16.msra.mxu1 %v643_v11 }
  0x2e   :  { %614 = vmatpush3.bf16.msra.mxu0 %v649_v27 }
  0x2f   :  { %615 = vmatprep.subr.bf16.mxu0 %v723_v0 }
  0x32   :  { %616 = vmatpush3.bf16.msra.mxu0 %v650_v28 }
  0x33   :  { %617 = vmatprep.subr.bf16.mxu0 %v723_v0 }
  0x36   :  { %618 = vmatpush3.bf16.msra.mxu0 %v651_v29 }
  0xd8   :  { %v112_v18 = vpop.f32.mrf.mxu0 }
  0xd9   :  { %v113_v20 = vadd.f32 %v527_v17, %v112_v18 }
  0xda   :  { %v581_v19 = vpop.f32.mrf.mxu0 }
  0xdb   :  { %v119_v24 = vmax.f32 %v113_v20, 0.0 }
  0xdc   :  { %v115_v21 = vpop.f32.mrf.mxu0 }
  0xdd   :  { %v116_v22 = vadd.f32 %v527_v17, %v115_v21 }
  0xde   :  { %v582_v23 = vpop.f32.mrf.mxu0 }
  0xdf   :  { %v120_v25 = vmax.f32 %v116_v22, 0.0 }
  0xe1   :  { %v121_v26 = vpack.c.bf16 %v120_v25, %v119_v24 }
  0xe3   :  { %600 = vmatmul.mubr.bf16.vlgmr.msra.gmra.mxu1 %v121_v26 }
 0x1a3   :  { %v227_v31 = vpop.f32.mrf.mxu1 }
 0x1a4   :  { %v228_v33 = vadd.f32 %v532_v30, %v227_v31 }
 0x1a5   :  { %v601_v32 = vpop.f32.mrf.mxu1 }
 0x1a6   :  { %v234_v37 = vmax.f32 %v228_v33, 0.0 }
 0x1a7   :  { %v230_v34 = vpop.f32.mrf.mxu1 }
 0x1a8   :  { %v231_v35 = vadd.f32 %v532_v30, %v230_v34 }
 0x1a9   :  { %v602_v36 = vpop.f32.mrf.mxu1 }
 0x1aa   :  { %v235_v38 = vmax.f32 %v231_v35, 0.0 }
 0x1ac   :  { %v236_v39 = vpack.c.bf16 %v235_v38, %v234_v37 }
 0x1ae   :  { %620 = vmatmul.mubr.bf16.vlgmr.msra.gmra.mxu0 %v236_v39 }
 0x26e   :  { %v342_v41 = vpop.f32.mrf.mxu0 }
 0x26f   :  { %v868_v42 = vadd.f32 %v541_v40, %v342_v41 }
 0x270   :  { %v621_v43 = vpop.f32.mrf.mxu0 }
 0x271   :  { %v359_v44 = vsel %vm358_vm2, %v868_v42, -inf  ;;  %v350_v45 = vsel %vm349_vm3, %v868_v42, -inf  ;;  %v368_v49 = vsel %vm367_vm4, %v868_v42, -inf  ;;  %v377_v54 = vsel %vm376_vm5, %v868_v42, -inf }
 0x272   :  { %360 = vmax.xlane.f32.xlu1 %v359_v44  ;;  %351 = vmax.xlane.f32.xlu0 %v350_v45  ;;  %v345_v46 = vpop.f32.mrf.mxu0  ;;  %v385_v3 = vand.u32 2147483647, %v868_v42  ;;  %vm470_vm11 = vcmp.ge.f32.partialorder %v868_v42, 0.0 }
 0x273   :  { %v873_v47 = vadd.f32 %v541_v40, %v345_v46 }
 0x274   :  { %v622_v48 = vpop.f32.mrf.mxu0  ;;  %v387_v13 = vsub.f32 0.0, %v385_v3 }
 0x275   :  { %v362_v50 = vsel %vm358_vm2, %v873_v47, -inf  ;;  %v371_v51 = vsel %vm367_vm4, %v873_v47, -inf  ;;  %v353_v52 = vsel %vm349_vm3, %v873_v47, -inf  ;;  %v380_v53 = vsel %vm376_vm5, %v873_v47, -inf }
 0x276   :  { %369 = vmax.xlane.f32.xlu0 %v368_v49  ;;  %363 = vmax.xlane.f32.xlu1 %v362_v50  ;;  %v386_v5 = vand.u32 2147483647, %v873_v47  ;;  %vm471_vm10 = vcmp.ge.f32.partialorder %v873_v47, 0.0 }
 0x278   :  { %v388_v14 = vsub.f32 0.0, %v386_v5 }
 0x27a   :  { %372 = vmax.xlane.f32.xlu1 %v371_v51  ;;  %354 = vmax.xlane.f32.xlu0 %v353_v52 }
 0x27e   :  { %381 = vmax.xlane.f32.xlu1 %v380_v53  ;;  %378 = vmax.xlane.f32.xlu0 %v377_v54 }
 0x2fb   :  { %v361_v55 = vpop.xlane.xlu1 %360  ;;  %v352_v56 = vpop.xlane.xlu0 %351 }
 0x2fc   :  { %v365_v61 = vsub.f32 %v868_v42, %v361_v55  ;;  %v356_v62 = vsub.f32 %v868_v42, %v352_v56 }
 0x2fe   :  { %v389_v8 = vsel %vm349_vm3, %v356_v62, %v365_v61 }
 0x2ff   :  { %v370_v57 = vpop.xlane.xlu0 %369  ;;  %v364_v58 = vpop.xlane.xlu1 %363 }
 0x300   :  { %v366_v63 = vsub.f32 %v873_v47, %v364_v58  ;;  %v374_v1 = vsub.f32 %v868_v42, %v370_v57 }
 0x302   :  { %v392_v11 = vsel %vm391_vm6, %v389_v8, %v374_v1 }
 0x303   :  { %v373_v59 = vpop.xlane.xlu1 %372  ;;  %v355_v60 = vpop.xlane.xlu0 %354 }
 0x304   :  { %v357_v0 = vsub.f32 %v873_v47, %v355_v60  ;;  %v375_v2 = vsub.f32 %v873_v47, %v373_v59 }
 0x306   :  { %v390_v4 = vsel %vm349_vm3, %v357_v0, %v366_v63 }
 0x307   :  { %v382_v6 = vpop.xlane.xlu1 %381  ;;  %v379_v7 = vpop.xlane.xlu0 %378  ;;  %v393_v12 = vsel %vm391_vm6, %v390_v4, %v375_v2 }
 0x308   :  { %v384_v9 = vsub.f32 %v873_v47, %v382_v6  ;;  %v383_v10 = vsub.f32 %v868_v42, %v379_v7 }
 0x30a   :  { %v396_v15 = vsel %vm394_vm7, %v393_v12, %v384_v9  ;;  %v395_v16 = vsel %vm394_vm7, %v392_v11, %v383_v10 }
 0x30b   :  { %v398_v17 = vsel %vm397_vm8, %v395_v16, %v387_v13  ;;  %v399_v18 = vsel %vm397_vm8, %v396_v15, %v388_v14 }
 0x30c   :  { %v400_v19 = vmul.f32 1.442695, %v398_v17  ;;  %v402_v20 = vmul.f32 1.442695, %v399_v18 }
 0x30e   :  { %652 = vpow2.f32 %v400_v19 }
 0x30f   :  { %654 = vpow2.f32 %v402_v20 }
 0x31b   :  { %v900_v21 = vpop.eup %652 }
 0x31c   :  { %432 = vrot.lane.b32.xlu1 %v900_v21, %s725_s4  ;;  %416 = vrot.lane.b32.xlu0 %v900_v21, %s726_s5  ;;  %v904_v22 = vpop.eup %654  ;;  %v404_v23 = vsel %vm349_vm3, %v900_v21, 0.0  ;;  %v464_v40 = vadd.f32 1.0, %v900_v21 }
 0x31d   :  { %v407_v24 = vsel %vm349_vm3, %v904_v22, 0.0  ;;  %v465_v38 = vadd.f32 1.0, %v904_v22 }
 0x31f   :  { %656 = vrcp.f32 %v465_v38 }
 0x320   :  { %418 = vrot.lane.b32.xlu1 %v904_v22, %s726_s5  ;;  %448 = vrot.lane.b32.xlu0 %v900_v21, %s727_s6  ;;  %658 = vrcp.f32 %v464_v40 }
 0x324   :  { %434 = vrot.lane.b32.xlu1 %v904_v22, %s725_s4 }
 0x328   :  { %450 = vrot.lane.b32.xlu1 %v904_v22, %s727_s6 }
 0x32c   :  { %v657_v49 = vpop.eup %656 }
 0x32d   :  { %v659_v52 = vpop.eup %658  ;;  %v473_v0 = vmul.f32 %v657_v49, %v904_v22 }
 0x32e   :  { %v472_v3 = vmul.f32 %v659_v52, %v900_v21 }
 0x32f   :  { %v475_v10 = vsel %vm471_vm10, %v657_v49, %v473_v0 }
 0x330   :  { %v474_v13 = vsel %vm470_vm11, %v659_v52, %v472_v3 }
 0x33f   :  { %405 = vadd.xlane.f32.xlu0 %v404_v23 }
 0x34c   :  { %408 = vadd.xlane.f32.xlu1 %v407_v24 }
 0x38e   :  { %v433_v25 = vpop.permute.xlu1 %432  ;;  %v417_v26 = vpop.permute.xlu0 %416 }
 0x38f   :  { %v422_v27 = vsel %vm349_vm3, %v417_v26, 0.0  ;;  %v438_v29 = vsel %vm349_vm3, %v433_v25, 0.0 }
 0x390   :  { %423 = vadd.xlane.f32.xlu0 %v422_v27 }
 0x392   :  { %v419_v28 = vpop.permute.xlu1 %418  ;;  %v449_v33 = vpop.permute.xlu0 %448 }
 0x393   :  { %v425_v32 = vsel %vm349_vm3, %v419_v28, 0.0  ;;  %v454_v36 = vsel %vm349_vm3, %v449_v33, 0.0 }
 0x394   :  { %439 = vadd.xlane.f32.xlu0 %v438_v29 }
 0x396   :  { %v435_v30 = vpop.permute.xlu1 %434 }
 0x397   :  { %v441_v31 = vsel %vm349_vm3, %v435_v30, 0.0 }
 0x398   :  { %442 = vadd.xlane.f32.xlu1 %v441_v31  ;;  %426 = vadd.xlane.f32.xlu0 %v425_v32 }
 0x39a   :  { %v451_v34 = vpop.permute.xlu1 %450 }
 0x39b   :  { %v457_v35 = vsel %vm349_vm3, %v451_v34, 0.0 }
 0x39c   :  { %458 = vadd.xlane.f32.xlu1 %v457_v35  ;;  %455 = vadd.xlane.f32.xlu0 %v454_v36 }
 0x3ad   :  { %499 = vrot.lane.b32.xlu1 %v873_v47, %s728_s28 }
 0x3b2   :  { %497 = vrot.lane.b32.xlu0 %v868_v42, %s728_s28 }
 0x3c8   :  { %v406_v37 = vpop.xlane.xlu0 %405 }
 0x3c9   :  { %660 = vrcp.f32 %v406_v37 }
 0x3d5   :  { %v409_v41 = vpop.xlane.xlu1 %408 }
 0x3d6   :  { %662 = vrcp.f32 %v409_v41  ;;  %v661_v53 = vpop.eup %660 }
 0x3d7   :  { %v411_v2 = vmul.f32 %v661_v53, %v900_v21 }
 0x3e3   :  { %v663_v54 = vpop.eup %662 }
 0x3e4   :  { %v413_v59 = vmul.f32 %v663_v54, %v904_v22 }
 0x419   :  { %v424_v39 = vpop.xlane.xlu0 %423 }
 0x41a   :  { %664 = vrcp.f32 %v424_v39 }
 0x41d   :  { %v440_v43 = vpop.xlane.xlu0 %439 }
 0x41e   :  { %666 = vrcp.f32 %v440_v43 }
 0x421   :  { %v443_v44 = vpop.xlane.xlu1 %442  ;;  %v427_v45 = vpop.xlane.xlu0 %426 }
 0x422   :  { %668 = vrcp.f32 %v443_v44 }
 0x423   :  { %670 = vrcp.f32 %v427_v45 }
 0x425   :  { %v459_v46 = vpop.xlane.xlu1 %458  ;;  %v456_v48 = vpop.xlane.xlu0 %455 }
 0x426   :  { %672 = vrcp.f32 %v459_v46 }
 0x427   :  { %674 = vrcp.f32 %v456_v48  ;;  %v665_v55 = vpop.eup %664 }
 0x428   :  { %v429_v60 = vmul.f32 %v665_v55, %v900_v21 }
 0x429   :  { %v500_v50 = vpop.permute.xlu1 %499  ;;  %v498_v51 = vpop.permute.xlu0 %497 }
 0x42a   :  { %505 = vst.msk [vmem:[%s964_s8 + $0x8] sm:$0xff] %vm503_vm9, %v500_v50  ;;  %504 = vst.msk [vmem:[%s964_s8] sm:$0xff] %vm503_vm9, %v498_v51  ;;  %v476_v8 = vsel %vm349_vm3, %v411_v2, %v429_v60  ;;  %s729_s8 = smov [#allocation5]  }
 0x42b   :  { %v667_v56 = vpop.eup %666  ;;  %s511_s13 = sshll.u32 %s729_s8, 4  ;;  %s512_s13 = int_to_ptr.vmem [resolvable:$true] %s511_s13 }
 0x42c   :  { %v445_v63 = vmul.f32 %v667_v56, %v900_v21  ;;  %s696_s0 = scalar_lea.vmem %s512_s13, 128  ;;  %p701_p6 = scmp.lt.s32.totalorder %s512_s13, %s512_s13 }
 0x42d   :  { %p697_p5 = scmp.ne.s32.totalorder %s512_s13, %s696_s0  ;;  %p702_p7 = scmp.lt.s32.totalorder %s696_s0, %s696_s0 }
 0x42e   :  { %v478_v11 = vsel %vm391_vm6, %v476_v8, %v445_v63 }
 0x42f   :  { %v669_v57 = vpop.eup %668  ;;  %p703_p8 = por %p702_p7, %p701_p6 }
 0x430   :  { %v671_v58 = vpop.eup %670  ;;  %v447_v61 = vmul.f32 %v669_v57, %v904_v22 }
 0x431   :  { %v431_v62 = vmul.f32 %v671_v58, %v904_v22  ;;  %p704_p9 = pnand %p703_p8, %p697_p5 }
 0x433   :  { %v673_v1 = vpop.eup %672  ;;  %v477_v4 = vsel %vm349_vm3, %v413_v59, %v431_v62 }
 0x434   :  { %v675_v5 = vpop.eup %674  ;;  %v463_v6 = vmul.f32 %v673_v1, %v904_v22  ;;  %v479_v9 = vsel %vm391_vm6, %v477_v4, %v447_v61 }
 0x435   :  { %v461_v7 = vmul.f32 %v675_v5, %v900_v21 }
 0x436   :  { %v481_v12 = vsel %vm394_vm7, %v479_v9, %v463_v6 }
 0x437   :  { %v480_v14 = vsel %vm394_vm7, %v478_v11, %v461_v7  ;;  %v483_v15 = vsel %vm397_vm8, %v481_v12, %v475_v10 }
 0x438   :  { %v482_v47 = vsel %vm397_vm8, %v480_v14, %v474_v13  ;;  %v553_v16 = vpack.c.bf16 %v483_v15, %v483_v15 }
 0x439   :  { %v552_v17 = vpack.c.bf16 %v482_v47, %v482_v47 }
 0x43a   :  { %494 = vst.msk [vmem:[#allocation5 + $0x4] sm:$0xf] %vm492_vm12, %v553_v16 }
 0x43b   :  { %493 = vst.msk [vmem:[#allocation5] sm:$0xf] %vm492_vm12, %v552_v17 }
 0x43c   :  { %707 = shalt.err (!%p704_p9)
}
 0x43d   :  { %517 = dma.vmem_to_hbm [thread:$0]  %s512_s13, 128, %s963_s7, [#allocation4], %s721_s30, %s721_s30, %s722_s9  }
 0x43e   :  { %718 = dma.done.wait [#allocation4], 128  }
 0x43f   :  { %719 = vsyncadd [#allocation4], 4294967168 }
 0x440   :  { %525 = vsyncpa [#allocation3], 1 }
 0x441   :  { %526 = vsyncpa [#allocation4], 1 }

</bundles_post_ra>
